<compile_context>
chip_gen: v6e
topology: v6e:2x2x1
jax: 0.10.0
libtpu: 0.0.40
codegen_flags: <defaults>
</compile_context>

<pallas_src>
import jax
import jax.numpy as jnp
from jax import lax
from jax.experimental import pallas as pl
from jax.experimental.pallas import tpu as pltpu


def _make_attention_kernel(scale, heads, head_dim, tokens, channels):
    H, D, N, C = heads, head_dim, tokens, channels

    def kernel(x_ref, wqkv_ref, bqkv_ref, wprojh_ref, bproj_ref,
               out_ref, attn_ref, qkv_sc):
        h = pl.program_id(1)

        # ---- once per batch element (h == 0): fused QKV projection ----------
        @pl.when(h == 0)
        def _():
            # One lane-dense (N,C)@(C,3C) bf16 MXU matmul, f32 accumulation,
            # single (1,3C) bias row add.
            qkv = (jnp.dot(x_ref[0], wqkv_ref[...],
                           preferred_element_type=jnp.float32)
                   + bqkv_ref[...])                               # (N, 3C) f32
            # Static scatter into the head-major (3H, N, D) bf16 scratch.
            # The softmax scale is folded into q here (N*C muls, once/batch).
            for hh in range(H):
                qkv_sc[hh] = (qkv[:, hh * D:(hh + 1) * D]
                              * scale).astype(qkv_sc.dtype)                 # q_h
                qkv_sc[H + hh] = qkv[:, C + hh * D:
                                     C + (hh + 1) * D].astype(qkv_sc.dtype)  # k_h
                qkv_sc[2 * H + hh] = qkv[:, 2 * C + hh * D:
                                         2 * C + (hh + 1) * D].astype(qkv_sc.dtype)  # v_h
            # Zero the resident output block (accumulated over heads below).
            out_ref[0] = jnp.zeros((N, C), dtype=out_ref.dtype)

        # ---- per-head attention (dynamic LEADING-axis reads, no lane slicing)
        q = qkv_sc[h]                                             # (N, D) bf16, pre-scaled
        k = qkv_sc[H + h]                                         # (N, D) bf16
        v = qkv_sc[2 * H + h]                                     # (N, D) bf16

        # Scores without materializing k.T: contract last dims of q and k.
        s = lax.dot_general(q, k,
                            dimension_numbers=(((1,), (1,)), ((), ())),
                            preferred_element_type=jnp.float32)   # (N, N) f32
        s = s - jnp.max(s, axis=-1, keepdims=True)
        e = jnp.exp(s)
        # EXACT reciprocal: the returned attention tensor must row-sum to 1.
        a = e * pl.reciprocal(jnp.sum(e, axis=-1, keepdims=True), approx=False)

        # Direct (B, H, N, N) emission: full-lane store, no wrapper transpose.
        attn_ref[0, 0] = a.astype(attn_ref.dtype)

        # Per-head context and per-head slice of the output projection:
        #   out += (a @ v_h) @ Wproj[h]   (== concat-heads(ctx) @ Wproj)
        pv = jnp.dot(a.astype(jnp.bfloat16), v,
                     preferred_element_type=jnp.float32)          # (N, D) f32
        contrib = jnp.dot(pv.astype(jnp.bfloat16), wprojh_ref[0],
                          preferred_element_type=jnp.float32)     # (N, C) f32
        out_ref[0] += contrib

        # ---- last head: add projection bias; block then flushes to HBM ------
        @pl.when(h == pl.num_programs(1) - 1)
        def _():
            out_ref[0] = (out_ref[0] + bproj_ref[...]).astype(out_ref.dtype)

    return kernel


def attention_forward(x, w_qkv, b_qkv, w_proj, b_proj, heads):
    """x: (B, N, C) float32.  Weights in PyTorch nn.Linear convention:
       w_qkv: (3C, C), b_qkv: (3C,), w_proj: (C, C), b_proj: (C,)."""
    B, N, C = x.shape
    H = heads
    D = C // H
    scale = float(D) ** -0.5

    # bf16 MXU operands (cast once, outside the kernel); biases stay f32.
    x_bf = x.astype(jnp.bfloat16)
    wqkv = w_qkv.T.astype(jnp.bfloat16)                       # (C, 3C): [q|k|v] head-major cols
    bqkv = b_qkv.reshape(1, 3 * C).astype(jnp.float32)        # (1, 3C)
    wprojh = w_proj.T.reshape(H, D, C).astype(jnp.bfloat16)   # (H, D, C): per-head proj rows
    bproj = b_proj.reshape(1, C).astype(jnp.float32)          # (1, C)

    kernel = _make_attention_kernel(scale, H, D, N, C)

    # VMEM budget from the actual block sizes (+2x headroom) instead of the
    # default scoped limit (16 MiB v5e / 32 MiB v6e+).
    bf, f4 = 2, 4
    vmem_need = (2 * N * C * bf            # x block (double buffered)
                 + C * 3 * C * bf          # wqkv (single buffered, resident)
                 + 3 * C * f4              # bqkv
                 + 2 * D * C * bf          # per-head proj rows (double buffered)
                 + C * f4                  # bproj
                 + 2 * N * C * f4          # out block
                 + 2 * N * N * f4          # attn block
                 + 3 * H * N * D * bf)     # head-major qkv scratch
    vmem_limit = int(min(max(2 * vmem_need, 16 * 1024 * 1024), 64 * 1024 * 1024))

    cost = pl.CostEstimate(
        flops=(2 * B * N * C * 3 * C            # fused QKV
               + 2 * 2 * B * H * N * N * D      # scores + PV
               + 2 * B * N * C * C),            # output projection
        transcendentals=B * H * N * N,          # exp
        bytes_accessed=(B * N * C * bf + C * 3 * C * bf + C * C * bf
                        + 4 * C * f4 + B * N * C * f4 + B * H * N * N * f4),
    )

    # Constant-index blocks: single buffer (default 2-deep buys nothing here).
    if hasattr(pl, "Buffered"):
        resident = dict(pipeline_mode=pl.Buffered(1))
    else:  # graceful fallback on older jax
        resident = {}

    out, attn = pl.pallas_call(
        kernel,
        out_shape=[
            jax.ShapeDtypeStruct((B, N, C), jnp.float32),
            jax.ShapeDtypeStruct((B, H, N, N), jnp.float32),
        ],
        grid_spec=pltpu.PrefetchScalarGridSpec(
            num_scalar_prefetch=0,
            grid=(B, H),
            in_specs=[
                pl.BlockSpec((1, N, C), lambda b, h: (b, 0, 0)),              # x
                pl.BlockSpec((C, 3 * C), lambda b, h: (0, 0), **resident),    # wqkv (resident)
                pl.BlockSpec((1, 3 * C), lambda b, h: (0, 0), **resident),    # bqkv (resident)
                pl.BlockSpec((1, D, C), lambda b, h: (h, 0, 0)),              # Wproj rows of head h
                pl.BlockSpec((1, C), lambda b, h: (0, 0), **resident),        # bproj (resident)
            ],
            out_specs=[
                pl.BlockSpec((1, N, C), lambda b, h: (b, 0, 0)),        # out (resident over h)
                pl.BlockSpec((1, 1, N, N), lambda b, h: (b, h, 0, 0)),  # attn, lane-dense
            ],
            scratch_shapes=[
                pltpu.VMEM((3 * H, N, D), jnp.bfloat16),    # head-major q | k | v
            ],
        ),
        compiler_params=pltpu.CompilerParams(
            dimension_semantics=("parallel", "arbitrary"),
            vmem_limit_bytes=vmem_limit,
        ),
        cost_estimate=cost,
    )(x_bf, wqkv, bqkv, wprojh, bproj)

    return out, attn


def attention_reference(x, w_qkv, b_qkv, w_proj, b_proj, heads):
    """Pure-JAX (f32) reimplementation of the PyTorch forward, for verification."""
    B, N, C = x.shape
    H = heads
    D = C // H
    scale = float(D) ** -0.5
    qkv = x @ w_qkv.T + b_qkv                            # (B, N, 3C)
    qkv = qkv.reshape(B, N, 3, H, D).transpose(2, 0, 3, 1, 4)
    q, k, v = qkv[0], qkv[1], qkv[2]                     # (B, H, N, D)
    attn = (q @ jnp.swapaxes(k, -2, -1)) * scale         # (B, H, N, N)
    attn = jax.nn.softmax(attn, axis=-1)
    o = (attn @ v).transpose(0, 2, 1, 3).reshape(B, N, C)
    o = o @ w_proj.T + b_proj
    return o, attn


if __name__ == "__main__":
    B, N, C, H = 2, 8, 32, 4

    key = jax.random.PRNGKey(0)
    kx, k1, k2, k3, k4 = jax.random.split(key, 5)
    x = jax.random.normal(kx, (B, N, C), dtype=jnp.float32)

    # Deterministic "trunc_normal-ish" parameter init (synthetic; no checkpoint).
    w_qkv = 0.02 * jax.random.normal(k1, (3 * C, C), dtype=jnp.float32)
    b_qkv = 0.01 * jax.random.normal(k2, (3 * C,), dtype=jnp.float32)
    w_proj = 0.02 * jax.random.normal(k3, (C, C), dtype=jnp.float32)
    b_proj = 0.01 * jax.random.normal(k4, (C,), dtype=jnp.float32)

    out, attn = attention_forward(x, w_qkv, b_qkv, w_proj, b_proj, H)
    out = jax.block_until_ready(out)
    attn = jax.block_until_ready(attn)

    out_ref, attn_ref = attention_reference(x, w_qkv, b_qkv, w_proj, b_proj, H)

    assert out.shape == (B, N, C) and attn.shape == (B, H, N, N)
    # Exact softmax reciprocal -> attention rows sum to 1.
    assert jnp.allclose(jnp.sum(attn, axis=-1), 1.0, atol=1e-4)
    # bf16 MXU operands (f32 accumulation) -> looser tolerance than pure-f32.
    assert jnp.allclose(attn, attn_ref, atol=2e-3, rtol=2e-2)
    assert jnp.allclose(out, out_ref, atol=5e-3, rtol=5e-2)

    print("KERNEL_OK")
</pallas_src>

<mosaic_0001>
module attributes {stable_mosaic.version = 11 : i64} {
  func.func @kernel(%arg0: i32, %arg1: i32, %arg2: memref<1x8x32xbf16, #tpu.memory_space<vmem>>, %arg3: memref<32x96xbf16, #tpu.memory_space<vmem>>, %arg4: memref<1x96xf32, #tpu.memory_space<vmem>>, %arg5: memref<1x8x32xbf16, #tpu.memory_space<vmem>>, %arg6: memref<1x32xf32, #tpu.memory_space<vmem>>, %arg7: memref<1x8x32xf32, #tpu.memory_space<vmem>>, %arg8: memref<1x1x8x8xf32, #tpu.memory_space<vmem>>, %arg9: memref<12x8x8xbf16, #tpu.memory_space<vmem>>) attributes {dimension_semantics = [#tpu.dimension_semantics<parallel>, #tpu.dimension_semantics<arbitrary>], iteration_bounds = array<i64: 2, 4>, scalar_prefetch = 0 : i64, scratch_operands = 1 : i64, tpu.core_type = #tpu.core_type<tc>, window_params = [{transform_indices = @transform_0, window_bounds = array<i64: 1, 8, 32>}, {pipeline_mode = #tpu.pipeline_mode<synchronous>, transform_indices = @transform_1, window_bounds = array<i64: 32, 96>}, {pipeline_mode = #tpu.pipeline_mode<synchronous>, transform_indices = @transform_2, window_bounds = array<i64: 1, 96>}, {transform_indices = @transform_3, window_bounds = array<i64: 1, 8, 32>}, {pipeline_mode = #tpu.pipeline_mode<synchronous>, transform_indices = @transform_4, window_bounds = array<i64: 1, 32>}, {transform_indices = @transform_5, window_bounds = array<i64: 1, 8, 32>}, {transform_indices = @transform_6, window_bounds = array<i64: 1, 1, 8, 8>}]} {
    %c0_i32 = arith.constant 0 : i32
    %0 = arith.cmpi eq, %arg1, %c0_i32 : i32
    %1 = arith.extui %0 : i1 to i32
    %c0_i32_0 = arith.constant 0 : i32
    %2 = arith.cmpi ne, %1, %c0_i32_0 : i32
    scf.if %2 {
      %c0_24 = arith.constant 0 : index
      %c0_25 = arith.constant 0 : index
      %c0_26 = arith.constant 0 : index
      %43 = vector.load %arg2[%c0_24, %c0_25, %c0_26] : memref<1x8x32xbf16, #tpu.memory_space<vmem>>, vector<1x8x32xbf16>
      %44 = vector.shape_cast %43 : vector<1x8x32xbf16> to vector<8x32xbf16>
      %c0_27 = arith.constant 0 : index
      %c0_28 = arith.constant 0 : index
      %45 = vector.load %arg3[%c0_27, %c0_28] : memref<32x96xbf16, #tpu.memory_space<vmem>>, vector<32x96xbf16>
      %cst_29 = arith.constant dense<0.000000e+00> : vector<8x96xf32>
      %46 = tpu.matmul %44, %45, %cst_29 {dimension_numbers = #tpu.dot_dimension_numbers<[1], [0], [0], [1], [0, 0, 1, 1], [], []>} : vector<8x32xbf16>, vector<32x96xbf16>, vector<8x96xf32> -> vector<8x96xf32>
      %c0_30 = arith.constant 0 : index
      %c0_31 = arith.constant 0 : index
      %47 = vector.load %arg4[%c0_30, %c0_31] : memref<1x96xf32, #tpu.memory_space<vmem>>, vector<1x96xf32>
      %48 = vector.broadcast %47 : vector<1x96xf32> to vector<8x96xf32>
      %49 = arith.addf %46, %48 : vector<8x96xf32>
      %50 = vector.extract_strided_slice %49 {offsets = [0, 0], sizes = [8, 8], strides = [1, 1]} : vector<8x96xf32> to vector<8x8xf32>
      %cst_32 = arith.constant 0.353553385 : f32
      %51 = vector.broadcast %cst_32 : f32 to vector<8x8xf32>
      %52 = arith.mulf %50, %51 : vector<8x8xf32>
      %53 = arith.truncf %52 : vector<8x8xf32> to vector<8x8xbf16>
      %c0_33 = arith.constant 0 : index
      %c0_34 = arith.constant 0 : index
      %c0_35 = arith.constant 0 : index
      %54 = vector.load %arg9[%c0_33, %c0_34, %c0_35] : memref<12x8x8xbf16, #tpu.memory_space<vmem>>, vector<1x8x8xbf16>
      %55 = vector.shape_cast %54 : vector<1x8x8xbf16> to vector<8x8xbf16>
      %56 = vector.shape_cast %53 : vector<8x8xbf16> to vector<1x8x8xbf16>
      tpu.vector_store %arg9[%c0_33, %c0_34, %c0_35], %56 {strides = array<i32>} : memref<12x8x8xbf16, #tpu.memory_space<vmem>>, vector<1x8x8xbf16>,
      %57 = vector.extract_strided_slice %49 {offsets = [0, 32], sizes = [8, 8], strides = [1, 1]} : vector<8x96xf32> to vector<8x8xf32>
      %58 = arith.truncf %57 : vector<8x8xf32> to vector<8x8xbf16>
      %c4 = arith.constant 4 : index
      %c0_36 = arith.constant 0 : index
      %c0_37 = arith.constant 0 : index
      %59 = vector.load %arg9[%c4, %c0_36, %c0_37] : memref<12x8x8xbf16, #tpu.memory_space<vmem>>, vector<1x8x8xbf16>
      %60 = vector.shape_cast %59 : vector<1x8x8xbf16> to vector<8x8xbf16>
      %61 = vector.shape_cast %58 : vector<8x8xbf16> to vector<1x8x8xbf16>
      tpu.vector_store %arg9[%c4, %c0_36, %c0_37], %61 {strides = array<i32>} : memref<12x8x8xbf16, #tpu.memory_space<vmem>>, vector<1x8x8xbf16>,
      %62 = vector.extract_strided_slice %49 {offsets = [0, 64], sizes = [8, 8], strides = [1, 1]} : vector<8x96xf32> to vector<8x8xf32>
      %63 = arith.truncf %62 : vector<8x8xf32> to vector<8x8xbf16>
      %c8 = arith.constant 8 : index
      %c0_38 = arith.constant 0 : index
      %c0_39 = arith.constant 0 : index
      %64 = vector.load %arg9[%c8, %c0_38, %c0_39] : memref<12x8x8xbf16, #tpu.memory_space<vmem>>, vector<1x8x8xbf16>
      %65 = vector.shape_cast %64 : vector<1x8x8xbf16> to vector<8x8xbf16>
      %66 = vector.shape_cast %63 : vector<8x8xbf16> to vector<1x8x8xbf16>
      tpu.vector_store %arg9[%c8, %c0_38, %c0_39], %66 {strides = array<i32>} : memref<12x8x8xbf16, #tpu.memory_space<vmem>>, vector<1x8x8xbf16>,
      %67 = vector.extract_strided_slice %49 {offsets = [0, 8], sizes = [8, 8], strides = [1, 1]} : vector<8x96xf32> to vector<8x8xf32>
      %cst_40 = arith.constant 0.353553385 : f32
      %68 = vector.broadcast %cst_40 : f32 to vector<8x8xf32>
      %69 = arith.mulf %67, %68 : vector<8x8xf32>
      %70 = arith.truncf %69 : vector<8x8xf32> to vector<8x8xbf16>
      %c1 = arith.constant 1 : index
      %c0_41 = arith.constant 0 : index
      %c0_42 = arith.constant 0 : index
      %71 = vector.load %arg9[%c1, %c0_41, %c0_42] : memref<12x8x8xbf16, #tpu.memory_space<vmem>>, vector<1x8x8xbf16>
      %72 = vector.shape_cast %71 : vector<1x8x8xbf16> to vector<8x8xbf16>
      %73 = vector.shape_cast %70 : vector<8x8xbf16> to vector<1x8x8xbf16>
      tpu.vector_store %arg9[%c1, %c0_41, %c0_42], %73 {strides = array<i32>} : memref<12x8x8xbf16, #tpu.memory_space<vmem>>, vector<1x8x8xbf16>,
      %74 = vector.extract_strided_slice %49 {offsets = [0, 40], sizes = [8, 8], strides = [1, 1]} : vector<8x96xf32> to vector<8x8xf32>
      %75 = arith.truncf %74 : vector<8x8xf32> to vector<8x8xbf16>
      %c5 = arith.constant 5 : index
      %c0_43 = arith.constant 0 : index
      %c0_44 = arith.constant 0 : index
      %76 = vector.load %arg9[%c5, %c0_43, %c0_44] : memref<12x8x8xbf16, #tpu.memory_space<vmem>>, vector<1x8x8xbf16>
      %77 = vector.shape_cast %76 : vector<1x8x8xbf16> to vector<8x8xbf16>
      %78 = vector.shape_cast %75 : vector<8x8xbf16> to vector<1x8x8xbf16>
      tpu.vector_store %arg9[%c5, %c0_43, %c0_44], %78 {strides = array<i32>} : memref<12x8x8xbf16, #tpu.memory_space<vmem>>, vector<1x8x8xbf16>,
      %79 = vector.extract_strided_slice %49 {offsets = [0, 72], sizes = [8, 8], strides = [1, 1]} : vector<8x96xf32> to vector<8x8xf32>
      %80 = arith.truncf %79 : vector<8x8xf32> to vector<8x8xbf16>
      %c9 = arith.constant 9 : index
      %c0_45 = arith.constant 0 : index
      %c0_46 = arith.constant 0 : index
      %81 = vector.load %arg9[%c9, %c0_45, %c0_46] : memref<12x8x8xbf16, #tpu.memory_space<vmem>>, vector<1x8x8xbf16>
      %82 = vector.shape_cast %81 : vector<1x8x8xbf16> to vector<8x8xbf16>
      %83 = vector.shape_cast %80 : vector<8x8xbf16> to vector<1x8x8xbf16>
      tpu.vector_store %arg9[%c9, %c0_45, %c0_46], %83 {strides = array<i32>} : memref<12x8x8xbf16, #tpu.memory_space<vmem>>, vector<1x8x8xbf16>,
      %84 = vector.extract_strided_slice %49 {offsets = [0, 16], sizes = [8, 8], strides = [1, 1]} : vector<8x96xf32> to vector<8x8xf32>
      %cst_47 = arith.constant 0.353553385 : f32
      %85 = vector.broadcast %cst_47 : f32 to vector<8x8xf32>
      %86 = arith.mulf %84, %85 : vector<8x8xf32>
      %87 = arith.truncf %86 : vector<8x8xf32> to vector<8x8xbf16>
      %c2 = arith.constant 2 : index
      %c0_48 = arith.constant 0 : index
      %c0_49 = arith.constant 0 : index
      %88 = vector.load %arg9[%c2, %c0_48, %c0_49] : memref<12x8x8xbf16, #tpu.memory_space<vmem>>, vector<1x8x8xbf16>
      %89 = vector.shape_cast %88 : vector<1x8x8xbf16> to vector<8x8xbf16>
      %90 = vector.shape_cast %87 : vector<8x8xbf16> to vector<1x8x8xbf16>
      tpu.vector_store %arg9[%c2, %c0_48, %c0_49], %90 {strides = array<i32>} : memref<12x8x8xbf16, #tpu.memory_space<vmem>>, vector<1x8x8xbf16>,
      %91 = vector.extract_strided_slice %49 {offsets = [0, 48], sizes = [8, 8], strides = [1, 1]} : vector<8x96xf32> to vector<8x8xf32>
      %92 = arith.truncf %91 : vector<8x8xf32> to vector<8x8xbf16>
      %c6 = arith.constant 6 : index
      %c0_50 = arith.constant 0 : index
      %c0_51 = arith.constant 0 : index
      %93 = vector.load %arg9[%c6, %c0_50, %c0_51] : memref<12x8x8xbf16, #tpu.memory_space<vmem>>, vector<1x8x8xbf16>
      %94 = vector.shape_cast %93 : vector<1x8x8xbf16> to vector<8x8xbf16>
      %95 = vector.shape_cast %92 : vector<8x8xbf16> to vector<1x8x8xbf16>
      tpu.vector_store %arg9[%c6, %c0_50, %c0_51], %95 {strides = array<i32>} : memref<12x8x8xbf16, #tpu.memory_space<vmem>>, vector<1x8x8xbf16>,
      %96 = vector.extract_strided_slice %49 {offsets = [0, 80], sizes = [8, 8], strides = [1, 1]} : vector<8x96xf32> to vector<8x8xf32>
      %97 = arith.truncf %96 : vector<8x8xf32> to vector<8x8xbf16>
      %c10 = arith.constant 10 : index
      %c0_52 = arith.constant 0 : index
      %c0_53 = arith.constant 0 : index
      %98 = vector.load %arg9[%c10, %c0_52, %c0_53] : memref<12x8x8xbf16, #tpu.memory_space<vmem>>, vector<1x8x8xbf16>
      %99 = vector.shape_cast %98 : vector<1x8x8xbf16> to vector<8x8xbf16>
      %100 = vector.shape_cast %97 : vector<8x8xbf16> to vector<1x8x8xbf16>
      tpu.vector_store %arg9[%c10, %c0_52, %c0_53], %100 {strides = array<i32>} : memref<12x8x8xbf16, #tpu.memory_space<vmem>>, vector<1x8x8xbf16>,
      %101 = vector.extract_strided_slice %49 {offsets = [0, 24], sizes = [8, 8], strides = [1, 1]} : vector<8x96xf32> to vector<8x8xf32>
      %cst_54 = arith.constant 0.353553385 : f32
      %102 = vector.broadcast %cst_54 : f32 to vector<8x8xf32>
      %103 = arith.mulf %101, %102 : vector<8x8xf32>
      %104 = arith.truncf %103 : vector<8x8xf32> to vector<8x8xbf16>
      %c3 = arith.constant 3 : index
      %c0_55 = arith.constant 0 : index
      %c0_56 = arith.constant 0 : index
      %105 = vector.load %arg9[%c3, %c0_55, %c0_56] : memref<12x8x8xbf16, #tpu.memory_space<vmem>>, vector<1x8x8xbf16>
      %106 = vector.shape_cast %105 : vector<1x8x8xbf16> to vector<8x8xbf16>
      %107 = vector.shape_cast %104 : vector<8x8xbf16> to vector<1x8x8xbf16>
      tpu.vector_store %arg9[%c3, %c0_55, %c0_56], %107 {strides = array<i32>} : memref<12x8x8xbf16, #tpu.memory_space<vmem>>, vector<1x8x8xbf16>,
      %108 = vector.extract_strided_slice %49 {offsets = [0, 56], sizes = [8, 8], strides = [1, 1]} : vector<8x96xf32> to vector<8x8xf32>
      %109 = arith.truncf %108 : vector<8x8xf32> to vector<8x8xbf16>
      %c7 = arith.constant 7 : index
      %c0_57 = arith.constant 0 : index
      %c0_58 = arith.constant 0 : index
      %110 = vector.load %arg9[%c7, %c0_57, %c0_58] : memref<12x8x8xbf16, #tpu.memory_space<vmem>>, vector<1x8x8xbf16>
      %111 = vector.shape_cast %110 : vector<1x8x8xbf16> to vector<8x8xbf16>
      %112 = vector.shape_cast %109 : vector<8x8xbf16> to vector<1x8x8xbf16>
      tpu.vector_store %arg9[%c7, %c0_57, %c0_58], %112 {strides = array<i32>} : memref<12x8x8xbf16, #tpu.memory_space<vmem>>, vector<1x8x8xbf16>,
      %113 = vector.extract_strided_slice %49 {offsets = [0, 88], sizes = [8, 8], strides = [1, 1]} : vector<8x96xf32> to vector<8x8xf32>
      %114 = arith.truncf %113 : vector<8x8xf32> to vector<8x8xbf16>
      %c11 = arith.constant 11 : index
      %c0_59 = arith.constant 0 : index
      %c0_60 = arith.constant 0 : index
      %115 = vector.load %arg9[%c11, %c0_59, %c0_60] : memref<12x8x8xbf16, #tpu.memory_space<vmem>>, vector<1x8x8xbf16>
      %116 = vector.shape_cast %115 : vector<1x8x8xbf16> to vector<8x8xbf16>
      %117 = vector.shape_cast %114 : vector<8x8xbf16> to vector<1x8x8xbf16>
      tpu.vector_store %arg9[%c11, %c0_59, %c0_60], %117 {strides = array<i32>} : memref<12x8x8xbf16, #tpu.memory_space<vmem>>, vector<1x8x8xbf16>,
      %cst_61 = arith.constant 0.000000e+00 : f32
      %118 = vector.broadcast %cst_61 : f32 to vector<8x32xf32>
      %c0_62 = arith.constant 0 : index
      %c0_63 = arith.constant 0 : index
      %c0_64 = arith.constant 0 : index
      %119 = vector.load %arg7[%c0_62, %c0_63, %c0_64] : memref<1x8x32xf32, #tpu.memory_space<vmem>>, vector<1x8x32xf32>
      %120 = vector.shape_cast %119 : vector<1x8x32xf32> to vector<8x32xf32>
      %121 = vector.shape_cast %118 : vector<8x32xf32> to vector<1x8x32xf32>
      tpu.vector_store %arg7[%c0_62, %c0_63, %c0_64], %121 {strides = array<i32>} : memref<1x8x32xf32, #tpu.memory_space<vmem>>, vector<1x8x32xf32>,
    } else {
    }
    %3 = arith.index_cast %arg1 : i32 to index
    %c0 = arith.constant 0 : index
    %c0_1 = arith.constant 0 : index
    %4 = vector.load %arg9[%3, %c0, %c0_1] : memref<12x8x8xbf16, #tpu.memory_space<vmem>>, vector<1x8x8xbf16>
    %5 = vector.shape_cast %4 : vector<1x8x8xbf16> to vector<8x8xbf16>
    %c4_i32 = arith.constant 4 : i32
    %6 = arith.addi %c4_i32, %arg1 : i32
    %7 = arith.index_cast %6 : i32 to index
    %c0_2 = arith.constant 0 : index
    %c0_3 = arith.constant 0 : index
    %8 = vector.load %arg9[%7, %c0_2, %c0_3] : memref<12x8x8xbf16, #tpu.memory_space<vmem>>, vector<1x8x8xbf16>
    %9 = vector.shape_cast %8 : vector<1x8x8xbf16> to vector<8x8xbf16>
    %c8_i32 = arith.constant 8 : i32
    %10 = arith.addi %c8_i32, %arg1 : i32
    %11 = arith.index_cast %10 : i32 to index
    %c0_4 = arith.constant 0 : index
    %c0_5 = arith.constant 0 : index
    %12 = vector.load %arg9[%11, %c0_4, %c0_5] : memref<12x8x8xbf16, #tpu.memory_space<vmem>>, vector<1x8x8xbf16>
    %13 = vector.shape_cast %12 : vector<1x8x8xbf16> to vector<8x8xbf16>
    %cst = arith.constant dense<0.000000e+00> : vector<8x8xf32>
    %14 = tpu.matmul %5, %9, %cst {dimension_numbers = #tpu.dot_dimension_numbers<[1], [1], [0], [0], [0, 0, 1, 0], [], []>} : vector<8x8xbf16>, vector<8x8xbf16>, vector<8x8xf32> -> vector<8x8xf32>
    %cst_6 = arith.constant dense<0xFF800000> : vector<8xf32>
    %15 = vector.multi_reduction <maximumf>, %14, %cst_6 [1] : vector<8x8xf32> to vector<8xf32>
    %16 = vector.shape_cast %15 : vector<8xf32> to vector<8x1xf32>
    %17 = vector.broadcast %16 : vector<8x1xf32> to vector<8x8xf32>
    %18 = arith.subf %14, %17 : vector<8x8xf32>
    %19 = math.exp %18 : vector<8x8xf32>
    %cst_7 = arith.constant dense<0.000000e+00> : vector<8xf32>
    %20 = vector.multi_reduction <add>, %19, %cst_7 [1] : vector<8x8xf32> to vector<8xf32>
    %21 = vector.shape_cast %20 : vector<8xf32> to vector<8x1xf32>
    %22 = tpu.reciprocal %21 : vector<8x1xf32> -> vector<8x1xf32>
    %23 = vector.broadcast %22 : vector<8x1xf32> to vector<8x8xf32>
    %24 = arith.mulf %19, %23 : vector<8x8xf32>
    %c0_8 = arith.constant 0 : index
    %c0_9 = arith.constant 0 : index
    %c0_10 = arith.constant 0 : index
    %c0_11 = arith.constant 0 : index
    %25 = vector.load %arg8[%c0_8, %c0_9, %c0_10, %c0_11] : memref<1x1x8x8xf32, #tpu.memory_space<vmem>>, vector<1x1x8x8xf32>
    %26 = vector.shape_cast %25 : vector<1x1x8x8xf32> to vector<8x8xf32>
    %27 = vector.shape_cast %24 : vector<8x8xf32> to vector<1x1x8x8xf32>
    tpu.vector_store %arg8[%c0_8, %c0_9, %c0_10, %c0_11], %27 {strides = array<i32>} : memref<1x1x8x8xf32, #tpu.memory_space<vmem>>, vector<1x1x8x8xf32>,
    %28 = arith.truncf %24 : vector<8x8xf32> to vector<8x8xbf16>
    %cst_12 = arith.constant dense<0.000000e+00> : vector<8x8xf32>
    %29 = tpu.matmul %28, %13, %cst_12 {dimension_numbers = #tpu.dot_dimension_numbers<[1], [0], [0], [1], [0, 0, 1, 1], [], []>} : vector<8x8xbf16>, vector<8x8xbf16>, vector<8x8xf32> -> vector<8x8xf32>
    %30 = arith.truncf %29 : vector<8x8xf32> to vector<8x8xbf16>
    %c0_13 = arith.constant 0 : index
    %c0_14 = arith.constant 0 : index
    %c0_15 = arith.constant 0 : index
    %31 = vector.load %arg5[%c0_13, %c0_14, %c0_15] : memref<1x8x32xbf16, #tpu.memory_space<vmem>>, vector<1x8x32xbf16>
    %32 = vector.shape_cast %31 : vector<1x8x32xbf16> to vector<8x32xbf16>
    %cst_16 = arith.constant dense<0.000000e+00> : vector<8x32xf32>
    %33 = tpu.matmul %30, %32, %cst_16 {dimension_numbers = #tpu.dot_dimension_numbers<[1], [0], [0], [1], [0, 0, 1, 1], [], []>} : vector<8x8xbf16>, vector<8x32xbf16>, vector<8x32xf32> -> vector<8x32xf32>
    %c0_17 = arith.constant 0 : index
    %c0_18 = arith.constant 0 : index
    %c0_19 = arith.constant 0 : index
    %34 = vector.load %arg7[%c0_17, %c0_18, %c0_19] : memref<1x8x32xf32, #tpu.memory_space<vmem>>, vector<1x8x32xf32>
    %35 = vector.shape_cast %34 : vector<1x8x32xf32> to vector<8x32xf32>
    %36 = arith.addf %35, %33 : vector<8x32xf32>
    %c0_20 = arith.constant 0 : index
    %c0_21 = arith.constant 0 : index
    %c0_22 = arith.constant 0 : index
    %37 = vector.load %arg7[%c0_20, %c0_21, %c0_22] : memref<1x8x32xf32, #tpu.memory_space<vmem>>, vector<1x8x32xf32>
    %38 = vector.shape_cast %37 : vector<1x8x32xf32> to vector<8x32xf32>
    %39 = vector.shape_cast %36 : vector<8x32xf32> to vector<1x8x32xf32>
    tpu.vector_store %arg7[%c0_20, %c0_21, %c0_22], %39 {strides = array<i32>} : memref<1x8x32xf32, #tpu.memory_space<vmem>>, vector<1x8x32xf32>,
    %c3_i32 = arith.constant 3 : i32
    %40 = arith.cmpi eq, %arg1, %c3_i32 : i32
    %41 = arith.extui %40 : i1 to i32
    %c0_i32_23 = arith.constant 0 : i32
    %42 = arith.cmpi ne, %41, %c0_i32_23 : i32
    scf.if %42 {
      %c0_24 = arith.constant 0 : index
      %c0_25 = arith.constant 0 : index
      %c0_26 = arith.constant 0 : index
      %43 = vector.load %arg7[%c0_24, %c0_25, %c0_26] : memref<1x8x32xf32, #tpu.memory_space<vmem>>, vector<1x8x32xf32>
      %44 = vector.shape_cast %43 : vector<1x8x32xf32> to vector<8x32xf32>
      %c0_27 = arith.constant 0 : index
      %c0_28 = arith.constant 0 : index
      %45 = vector.load %arg6[%c0_27, %c0_28] : memref<1x32xf32, #tpu.memory_space<vmem>>, vector<1x32xf32>
      %46 = vector.broadcast %45 : vector<1x32xf32> to vector<8x32xf32>
      %47 = arith.addf %44, %46 : vector<8x32xf32>
      %c0_29 = arith.constant 0 : index
      %c0_30 = arith.constant 0 : index
      %c0_31 = arith.constant 0 : index
      %48 = vector.load %arg7[%c0_29, %c0_30, %c0_31] : memref<1x8x32xf32, #tpu.memory_space<vmem>>, vector<1x8x32xf32>
      %49 = vector.shape_cast %48 : vector<1x8x32xf32> to vector<8x32xf32>
      %50 = vector.shape_cast %47 : vector<8x32xf32> to vector<1x8x32xf32>
      tpu.vector_store %arg7[%c0_29, %c0_30, %c0_31], %50 {strides = array<i32>} : memref<1x8x32xf32, #tpu.memory_space<vmem>>, vector<1x8x32xf32>,
    } else {
    }
    return
  }
  func.func @transform_0(%arg0: i32, %arg1: i32) -> (i32, i32, i32) {
    %c0_i32 = arith.constant 0 : i32
    %c0_i32_0 = arith.constant 0 : i32
    %c0_i32_1 = arith.constant 0 : i32
    return %arg0, %c0_i32, %c0_i32_0 : i32, i32, i32
  }
  func.func @transform_1(%arg0: i32, %arg1: i32) -> (i32, i32) {
    %c0_i32 = arith.constant 0 : i32
    %c0_i32_0 = arith.constant 0 : i32
    %c0_i32_1 = arith.constant 0 : i32
    return %c0_i32, %c0_i32_0 : i32, i32
  }
  func.func @transform_2(%arg0: i32, %arg1: i32) -> (i32, i32) {
    %c0_i32 = arith.constant 0 : i32
    %c0_i32_0 = arith.constant 0 : i32
    %c0_i32_1 = arith.constant 0 : i32
    return %c0_i32, %c0_i32_0 : i32, i32
  }
  func.func @transform_3(%arg0: i32, %arg1: i32) -> (i32, i32, i32) {
    %c0_i32 = arith.constant 0 : i32
    %c0_i32_0 = arith.constant 0 : i32
    %c0_i32_1 = arith.constant 0 : i32
    return %arg1, %c0_i32, %c0_i32_0 : i32, i32, i32
  }
  func.func @transform_4(%arg0: i32, %arg1: i32) -> (i32, i32) {
    %c0_i32 = arith.constant 0 : i32
    %c0_i32_0 = arith.constant 0 : i32
    %c0_i32_1 = arith.constant 0 : i32
    return %c0_i32, %c0_i32_0 : i32, i32
  }
  func.func @transform_5(%arg0: i32, %arg1: i32) -> (i32, i32, i32) {
    %c0_i32 = arith.constant 0 : i32
    %c0_i32_0 = arith.constant 0 : i32
    %c0_i32_1 = arith.constant 0 : i32
    return %arg0, %c0_i32, %c0_i32_0 : i32, i32, i32
  }
  func.func @transform_6(%arg0: i32, %arg1: i32) -> (i32, i32, i32, i32) {
    %c0_i32 = arith.constant 0 : i32
    %c0_i32_0 = arith.constant 0 : i32
    %c0_i32_1 = arith.constant 0 : i32
    return %arg0, %arg1, %c0_i32, %c0_i32_0 : i32, i32, i32, i32
  }
}

</mosaic_0001>

<bundles_post_ra>
// kernel: tpu_custom_call.1
= control target key start
LH: loop header
LB: loop body
LE: loop exit
PB: predicated region body
PF: predicated region fallthrough
CT: control target
= control target key end

     0   :  { %s1802_s0 = inlined_call_operand.hbm [shape: bf16[2,8,32], index: 0, kind: input, shape index: {}]   ;;  %s1803_s1 = inlined_call_operand.hbm [shape: bf16[32,96], index: 1, kind: input, shape index: {}]   ;;  %s1804_s2 = inlined_call_operand.vmem [shape: f32[1,96], index: 2, kind: input, shape index: {}]   ;;  %s1805_s3 = inlined_call_operand.hbm [shape: bf16[4,8,32], index: 3, kind: input, shape index: {}]   ;;  %s1806_s4 = inlined_call_operand.vmem [shape: f32[1,32], index: 4, kind: input, shape index: {}]   ;;  %s1807_s5 = inlined_call_operand.hbm [shape: f32[2,8,32], index: 5, kind: output, shape index: {0}]   ;;  %s1808_s6 = inlined_call_operand.hbm [shape: f32[2,4,8,8], index: 6, kind: output, shape index: {1}]  }
   0x1   :  { %1837 = sst [smem:[#allocation32_spill]] %s1802_s0 }
   0x2   :  { %1838 = sst [smem:[#allocation33_spill]] %s1803_s1 }
   0x3   :  { %1839 = sst [smem:[#allocation34_spill]] %s1804_s2 }
   0x4   :  { %1840 = sst [smem:[#allocation35_spill]] %s1805_s3 }
   0x5   :  { %1841 = sst [smem:[#allocation36_spill]] %s1806_s4 }
   0x6   :  { %1842 = sst [smem:[#allocation37_spill]] %s1807_s5 }
   0x7   :  { %1843 = sst [smem:[#allocation38_spill]] %s1808_s6 }
   0x8   :  { %12 = vsyncpa [#allocation4], 0 }
   0x9   :  { %14 = vsyncpa [#allocation4 + $0x1], 0 }
   0xa   :  { %15 = vsyncpa [#allocation7], 0 }
   0xb   :  { %16 = vsyncpa [#allocation5], 0 }
   0xc   :  { %18 = vsyncpa [#allocation5 + $0x1], 0 }
   0xd   :  { %19 = vsyncpa [#allocation11], 0 }
   0xe   :  { %21 = vsyncpa [#allocation11 + $0x1], 0  ;;  %s1421_s21 = smov 0   ;;  %s1423_s22 = smov 0  }
   0xf   :  { %s1425_s23 = smov 0   ;;  %s1427_s24 = smov 0  }
  0x10   :  { %s1429_s25 = smov 0   ;;  %s1431_s26 = smov 0  }
  0x11   :  { %s1433_s27 = smov 0   ;;  %s1435_s28 = smov 0  }
  0x12   :  { %s1437_s29 = smov 0   ;;  %s1439_s30 = smov 0  }
  0x13   :  { %s1441_s7 = smov 0   ;;  %s1443_s8 = smov 0  }
  0x14   :  { %s1445_s9 = smov 0   ;;  %s1447_s10 = smov 0  }
  0x15 LB: > { %1844 = sst [smem:[#allocation17_spill]] %s1310_s21  ;;  %s1492_s11 = sadd.s32 4294967295, %s1362_s10   ;;  %s1362_s10 = sphi %s1447_s10, %s27_s10   ;;  %s1358_s9 = sphi %s1445_s9, %s1909_s9   ;;  %s1354_s8 = sphi %s1443_s8, %s1908_s8   ;;  %s1350_s7 = sphi %s1441_s7, %s1907_s7   ;;  %s1346_s30 = sphi %s1439_s30, %s1906_s30   ;;  %s1342_s29 = sphi %s1437_s29, %s1916_s29   ;;  %s1338_s28 = sphi %s1435_s28, %s1915_s28   ;;  %s1334_s27 = sphi %s1433_s27, %s1914_s27   ;;  %s1330_s26 = sphi %s1431_s26, %s1913_s26   ;;  %s1326_s25 = sphi %s1429_s25, %s1912_s25   ;;  %s1322_s24 = sphi %s1427_s24, %s1904_s24   ;;  %s1318_s23 = sphi %s1425_s23, %s1911_s23   ;;  %s1314_s22 = sphi %s1423_s22, %s1910_s22   ;;  %s1310_s21 = sphi %s1421_s21, %s1903_s21  }
  0x16   : > { %1845 = sst [smem:[#allocation18_spill]] %s1314_s22  ;;  %s853_s12 = sadd.s32 4294967294, %s1362_s10  }
  0x17   : > { %1846 = sst [smem:[#allocation19_spill]] %s1326_s25  ;;  %p53_p0 = scmp.ne.s32.totalorder %s1342_s29, %s1338_s28 }
  0x18   : > { %1847 = sst [smem:[#allocation20_spill]] %s1334_s27  ;;  %p1817_p1 = scmp.eq.s32.totalorder %s1362_s10, 0 }
  0x19   : > { %1848 = sst [smem:[#allocation21_spill]] %s1346_s30  ;;  %p59_p2 = scmp.ne.s32.totalorder %s1338_s28, %s1334_s27 }
  0x1a   : > { %1849 = sst [smem:[#allocation22_spill]] %s1350_s7  ;;  %p172_p3 = scmp.eq.s32.totalorder %s1492_s11, 7 }
  0x1b   : > { %1850 = sst [smem:[#allocation23_spill]] %s1354_s8  ;;  %p1505_p4 = por %p1817_p1, %p53_p0 }
  0x1c   : > { %1851 = sst [smem:[#allocation24_spill]] %s1358_s9  ;;  %p178_p5 = scmp.eq.s32.totalorder %s853_s12, 7 }
  0x1d   : > { %p1509_p6 = por %p172_p3, %p53_p0  ;;  %p199_p7 = scmp.ne.s32.totalorder %s1318_s23, %s1314_s22 }
  0x1e   : > { %p1518_p8 = por %p178_p5, %p59_p2  ;;  %p205_p9 = scmp.ne.s32.totalorder %s1314_s22, %s1310_s21 }
  0x1f   : > { %s1853_s16 = scalar_select %p1509_p6, 1, 0 }
  0x20   : > { %s1855_s17 = scalar_select %p1518_p8, 1, 0 }
  0x21   : > { %1854 = sst [smem:[#allocation25_spill]] %s1853_s16  ;;  %p1524_p10 = por %p199_p7, %p172_p3 }
  0x22   : > { %1856 = sst [smem:[#allocation26_spill]] %s1855_s17  ;;  %p1528_p11 = por %p205_p9, %p178_p5 }
  0x23   : > { %s1857_s18 = scalar_select %p1524_p10, 1, 0 }
  0x24   : > { %s1859_s19 = scalar_select %p1528_p11, 1, 0 }
  0x25   : > { %1858 = sst [smem:[#allocation27_spill]] %s1857_s18  ;;  %p1818_p12 = scmp.lt.s32.totalorder %s1362_s10, 8 }
  0x26   : > { %1860 = sst [smem:[#allocation28_spill]] %s1859_s19  ;;  %s245_s20 = sand.u32 1, %s1362_s10  }
  0x27   : > { %s247_s12 = sand.u32 1, %s1342_s29   ;;  %s858_s13 = sshll.u32 %s1358_s9, 6 }
  0x28   : > { %s857_s14 = sshll.u32 %s247_s12, 2  ;;  %s1861_s0 = sld [smem:[#allocation32_spill]] }
  0x29   : > { %s249_s7 = scalar_lea.vmem [#allocation3], %s857_s14  ;;  %p1543_p13 = pnand %p1818_p12, %p1505_p4 }
  0x2a   : > { %s256_s17 = sshll.u32 %s249_s7, 4  ;;  %s1547_s19 = scalar_lea.sflag [#allocation4], %s245_s20  ;;  %s257_s17 = int_to_ptr.vmem [resolvable:$true] %s256_s17 }
  0x2b   : > { %p1100_p0 = pneg %p1543_p13  ;;  %s1111_s12 = scalar_lea.vmem %s257_s17, 64 }
  0x2c   : > { %p1112_p3 = scmp.ne.s32.totalorder %s257_s17, %s1111_s12  ;;  %s1364_s5 = smov [#allocation3]  }
  0x2d   : > { %s1116_s6 = sshll.u32 %s1364_s5, 4  ;;  %s1117_s6 = int_to_ptr.vmem [resolvable:$false] %s1116_s6 }
  0x2e   : > { %s254_s16 = scalar_lea.hbm %s1861_s0, %s858_s13  ;;  %p1114_p5 = pnand %p1112_p3, %p1100_p0 }
  0x2f   : > { %s1118_s7 = scalar_lea.vmem %s1117_s6, 128  ;;  %p1119_p9 = scmp.lt.s32.totalorder %s257_s17, %s1117_s6 }
  0x30   : > { %p1115_p7 = pneg %p1114_p5  ;;  %p1120_p1 = scmp.lt.s32.totalorder %s1118_s7, %s1111_s12 }
  0x32   : > { %p1121_p4 = por %p1120_p1, %p1119_p9 }
  0x34   : > { %p1122_p12 = pnand %p1121_p4, %p1115_p7 }
  0x36   : > { %1125 = shalt.err (!%p1122_p12)
}
  0x37   : > { %947 = dma.hbm_to_vmem [thread:$0]  (!%p1543_p13), %s254_s16, 64, %s257_s17, %s1547_s19  }
  0x38   : > { %p60_p0 = scmp.eq.s32.totalorder %s1492_s11, 0  ;;  %p854_p3 = scmp.ge.s32.totalorder %s1362_s10, 1 }
  0x39   : > { %p213_p5 = scmp.lt.s32.totalorder %s1362_s10, 9  ;;  %s1365_s14 = smov [#allocation6]  }
  0x3a   : > { %p1562_p11 = por %p60_p0, %p59_p2  ;;  %s225_s21 = sshll.u32 %s1365_s14, 4  ;;  %s226_s21 = int_to_ptr.vmem [resolvable:$true] %s225_s21 }
  0x3b   : > { %p1566_p1 = pnand %p854_p3, %p213_p5  ;;  %s1137_s16 = scalar_lea.vmem %s226_s21, 256 }
  0x3c   : > { %s1863_s13 = scalar_select %p1562_p11, 1, 0 }
  0x3d   : > { %p940_p12 = pneg %p1566_p1  ;;  %p1138_p9 = scmp.ne.s32.totalorder %s226_s21, %s1137_s16 }
  0x3e   : > { %p1145_p8 = scmp.lt.s32.totalorder %s226_s21, %s226_s21  ;;  %p1146_p10 = scmp.lt.s32.totalorder %s1137_s16, %s1137_s16 }
  0x3f   : > { %p941_p13 = pnand %p940_p12, %p60_p0 }
  0x40   : > { %p1147_p6 = por %p1146_p10, %p1145_p8 }
  0x41   : > { %p1128_p7 = pneg %p941_p13 }
  0x43   : > { %p1140_p4 = pnand %p1138_p9, %p1128_p7 }
  0x45   : > { %p1141_p2 = pneg %p1140_p4 }
  0x47   : > { %p1148_p11 = pnand %p1147_p6, %p1141_p2 }
  0x49   : > { %1151 = shalt.err (!%p1148_p11)
}
  0x4a   : > { %s1366_s17 = smov 64   ;;  %s1367_s20 = smov 4  }
  0x4b   : > { %s1865_s1 = sld [smem:[#allocation33_spill]]  ;;  %s36_s6 = sadd.s32 1, %s1354_s8 }
  0x4c   : > { %p37_p6 = scmp.ge.s32.totalorder %s36_s6, 4  ;;  %s114_s7 = sadd.s32 1, %s1330_s26 }
  0x4d   : > { %p121_p8 = scmp.ne.s32.totalorder %s1330_s26, %s1326_s25  ;;  %p127_p10 = scmp.ne.s32.totalorder %s1326_s25, %s1322_s24 }
  0x4e   : > { %s1918_s6 = smov (%p37_p6, %s36_s6), 0  ;;  %s1867_s14 = sadd.s32 1, %s1358_s9 }
  0x4f   : > { %1866 = sst [smem:[#allocation29_spill]] %s1918_s6  ;;  %s1920_s14 = smov (!%p37_p6, %s1867_s14), %s1358_s9 }
  0x50   : > { %s111_s16 = ssub.s32 %s1354_s8, %s1918_s6  ;;  %p1868_p11 = scmp.eq.s32.totalorder %s1362_s10, 0 }
  0x51   : > { %943 = dma.hbm_to_vmem [thread:$0]  (!%p941_p13), %s1865_s1, 256, %s226_s21, [#allocation7], %s1366_s17, %s1366_s17, %s1367_s20  }
  0x52   : > { %p1592_p3 = por %p121_p8, %p1868_p11  ;;  %p41_p5 = scmp.ge.s32.totalorder %s1920_s14, 2 }
  0x53   : > { %p112_p12 = scmp.eq.s32.totalorder %s111_s16, 0  ;;  %p1598_p13 = por %p127_p10, %p60_p0 }
  0x54   : > { %s189_s17 = sadd.s32 1, %s1318_s23  ;;  %s1922_s14 = smov (%p41_p5, %s1920_s14), 0 }
  0x55   : > { %s1870_s24 = scalar_select %p1598_p13, 1, 0 }
  0x56   : > { %1872 = sst [smem:[#allocation31_spill]] %s1922_s14  ;;  %s43_s12 = ssub.s32 %s1358_s9, %s1922_s14 }
  0x57   : > { %1871 = sst [smem:[#allocation30_spill]] %s1870_s24  ;;  %s265_s5 = sand.u32 1, %s1330_s26  }
  0x58   : > { %s1606_s20 = scalar_select %p112_p12, %s1330_s26, %s114_s7  }
  0x59   : > { %p44_p7 = scmp.eq.s32.totalorder %s43_s12, 0  ;;  %s186_s0 = sor.u32 %s111_s16, %s43_s12 }
  0x5a   : > { %p187_p9 = scmp.eq.s32.totalorder %s186_s0, 0  ;;  %s859_s1 = sshll.u32 %s265_s5, 2 }
  0x5b   : > { %s1873_s6 = sadd.s32 1, %s1342_s29  ;;  %s860_s4 = sshll.u32 %s1354_s8, 6 }
  0x5c   : > { %s1614_s27 = scalar_select %p44_p7, %s1342_s29, %s1873_s6  }
  0x5d   : > { %s1617_s18 = scalar_select %p187_p9, %s1318_s23, %s189_s17  }
  0x5e   : > { %s1874_s3 = sld [smem:[#allocation35_spill]]  ;;  %s267_s24 = scalar_lea.vmem [#allocation8], %s859_s1 }
  0x5f   : > { %s274_s25 = sshll.u32 %s267_s24, 4  ;;  %p1875_p4 = scmp.lt.s32.totalorder %s1362_s10, 8  ;;  %s275_s25 = int_to_ptr.vmem [resolvable:$true] %s274_s25 }
  0x60   : > { %s1165_s0 = scalar_lea.vmem %s275_s25, 64  ;;  %s1368_s6 = smov [#allocation8]  }
  0x61   : > { %p1627_p2 = pnand %p1875_p4, %p1592_p3  ;;  %p1166_p8 = scmp.ne.s32.totalorder %s275_s25, %s1165_s0 }
  0x62   : > { %s1170_s16 = sshll.u32 %s1368_s6, 4  ;;  %s1171_s16 = int_to_ptr.vmem [resolvable:$false] %s1170_s16 }
  0x63   : > { %p1154_p6 = pneg %p1627_p2  ;;  %s1172_s2 = scalar_lea.vmem %s1171_s16, 128 }
  0x64   : > { %s272_s22 = scalar_lea.hbm %s1874_s3, %s860_s4  ;;  %p1173_p5 = scmp.lt.s32.totalorder %s275_s25, %s1171_s16 }
  0x65   : > { %p1168_p10 = pnand %p1166_p8, %p1154_p6  ;;  %p1174_p12 = scmp.lt.s32.totalorder %s1172_s2, %s1165_s0 }
  0x67   : > { %p1169_p11 = pneg %p1168_p10  ;;  %p1175_p7 = por %p1174_p12, %p1173_p5 }
  0x69   : > { %p1176_p9 = pnand %p1175_p7, %p1169_p11 }
  0x6b   : > { %1179 = shalt.err (!%p1176_p9)
}
  0x6c   : > { %950 = dma.hbm_to_vmem [thread:$0]  (!%p1627_p2), %s272_s22, 64, %s275_s25, %s1547_s19  }
  0x6d   : > { %283 = sbr.rel (%p1566_p1) target bundleno = 1463 (0x5b7), region = 40  ;;  %s285_s1 = sand.u32 (!%p1566_p1), 1, %s1492_s11  }
  0x6e   : > { %s1640_s4 = sand.u32 (!%p1566_p1), 1, %s1338_s28   ;;  %s286_s21 = scalar_lea.sflag (!%p1566_p1), [#allocation4], %s285_s1 }
  0x6f   : > { %s862_s30 = sshll.u32 (!%p1566_p1), %s1640_s4, 2  ;;  %p1877_p3 = scmp.ne.s32.totalorder (!%p1566_p1), %s1863_s13, 0 }
  0x70   : > { %s289_s24 = scalar_lea.vmem (!%p1566_p1), [#allocation3], %s862_s30 }
  0x72   : > { %1289 = dma.done.wait (%p1877_p3), %s286_s21, 64  }
  0x73   : > { %1291 = vsyncadd (%p1877_p3), %s286_s21, 4294967232 }
  0x74   : > { %1293 = dma.done.wait (%p60_p0), [#allocation7], 256  }
  0x75   : > { %1295 = vsyncadd (%p60_p0), [#allocation7], 4294967040  ;;  %s1878_s22 = sld [smem:[#allocation19_spill]] }
  0x7b   : > { %s300_s19 = sand.u32 1, %s1878_s22  }
  0x7c   : > { %s1652_s15 = sshll.u32 %s300_s19, 2 }
  0x7d   : > { %s302_s17 = scalar_lea.vmem [#allocation8], %s1652_s15 }
  0x7e   : > { %1297 = dma.done.wait (%p1598_p13), %s286_s21, 64  }
  0x7f   : > { %1299 = vsyncadd (%p1598_p13), %s286_s21, 4294967232  ;;  %s1880_s13 = sld [smem:[#allocation18_spill]]  ;;  %s865_s12 = sshll.u32 %s1640_s4, 3 }
  0x80   : > { %s1665_s7 = scalar_lea.vmem [#allocation9], %s865_s12  ;;  %s1881_s6 = sld [smem:[#allocation21_spill]] }
  0x85   : > { %s1832_s5 = sand.u32 1, %s1880_s13  }
  0x86   : > { %s1663_s11 = sshll.u32 %s1832_s5, 3  ;;  %p867_p0 = scmp.ne.s32.totalorder %s1881_s6, 0 }
  0x87   : > { %s340_s0 = scalar_lea.vmem [#allocation10], %s1663_s11  ;;  %s1882_s1 = sld [smem:[#allocation34_spill]] (!%p867_p0) }
  0x88   : > { %345 = sbr.rel (%p867_p0) target bundleno = 483 (0x1e3), region = 56  ;;  %s1371_s30 = smov (!%p867_p0), 88  }
  0x89   : > { %s1372_s21 = smov (!%p867_p0), 96   ;;  %s1374_s22 = smov (!%p867_p0), 64  }
  0x8a   : > { %s1375_s25 = smov (!%p867_p0), 56   ;;  %s1376_s19 = smov (!%p867_p0), 120  }
  0x8b   : > { %s1377_s13 = smov (!%p867_p0), 80   ;;  %s1378_s12 = smov (!%p867_p0), 112  }
  0x8c   : > { %s1379_s6 = smov (!%p867_p0), 104   ;;  %s1380_s16 = smov (!%p867_p0), 72  }
  0x8d   : > { %v1092_v0 = vld [vmem:[#allocation6 + $0x8] sm:$0xff]   ;;  %v1369_v1 = vmov 0.0   ;;  %v1093_v2 = vld [vmem:[#allocation6] sm:$0xff]   ;;  %vm1370_vm0 = vmmov 0   ;;  %vm370_vm1 = vcmask 261120   ;;  %vm416_vm2 = vcmask 60416  }
  0x8e   : > { %902 = vmatprep.subr.bf16.mxu0 %v1369_v1  ;;  %906 = vmatprep.mubr.msk.bf16.mxu0 %vm1370_vm0, %v1369_v1  ;;  %480 = vst.msk [vmem:[%s1665_s7] sm:$0xff] %vm370_vm1, %v1369_v1  ;;  %v346_v3 = vld [vmem:[%s289_s24] sm:$0xf]  ;;  %v868_v4 = vld [vmem:[%s1882_s1] ss:$0 sm:$0xff]  ;;  %s1373_s24 = smov 48  }
  0x8f   : > { %903 = vmatpush3.bf16.msra.mxu0 %v1092_v0  ;;  %s1381_s2 = smov 40  }
  0x90   : > { %904 = vmatprep.subr.bf16.mxu0 %v1369_v1 }
  0x93   : > { %905 = vmatpush3.bf16.msra.mxu0 %v1093_v2 }
  0x96   : > { %907 = vmatmul.mubr.msk.bf16.vlgmr.msra.gmra.mxu0 %vm370_vm1, %v346_v3 }
 0x156   : > { %v408_v5 = vpop.f32.mrf.mxu0 }
 0x157   : > { %v409_v6 = vadd.f32 %v868_v4, %v408_v5 }
 0x158   : > { %v908_v7 = vpop.f32.mrf.mxu0 }
 0x159   : > { %v414_v8 = vmul.f32 0.35355338, %v409_v6  ;;  %v891_v9 = vpack.c.bf16 %v409_v6, %v409_v6 }
 0x15a   : > { %v411_v10 = vpop.f32.mrf.mxu0 }
 0x15b   : > { %v415_v11 = vpack.c.bf16 %v414_v8, %v414_v8  ;;  %440 = vrot.lane.b32.xlu1 %v891_v9, %s1371_s30  ;;  %422 = vrot.lane.b32.xlu0 %v891_v9, %s1372_s21 }
 0x15c   : > { %v909_v12 = vpop.f32.mrf.mxu0 }
 0x15d   : > { %417 = vst.msk [vmem:[#allocation2] sm:$0xf] %vm416_vm2, %v415_v11 }
 0x15f   : > { %460 = vrot.lane.b32.xlu1 %v891_v9, %s1373_s24  ;;  %427 = vrot.lane.b32.xlu0 %v891_v9, %s1374_s22 }
 0x163   : > { %445 = vrot.lane.b32.xlu0 %v891_v9, %s1375_s25  ;;  %435 = vrot.lane.b32.xlu1 %v415_v11, %s1376_s19 }
 0x167   : > { %455 = vrot.lane.b32.xlu0 %v891_v9, %s1377_s13  ;;  %450 = vrot.lane.b32.xlu1 %v415_v11, %s1378_s12 }
 0x16b   : > { %465 = vrot.lane.b32.xlu0 %v415_v11, %s1379_s6  ;;  %470 = vrot.lane.b32.xlu1 %v891_v9, %s1380_s16 }
 0x16f   : > { %475 = vrot.lane.b32.xlu0 %v891_v9, %s1381_s2 }
 0x1cd   : > { %v441_v13 = vpop.permute.xlu1 %440  ;;  %v423_v14 = vpop.permute.xlu0 %422 }
 0x1ce   : > { %444 = vst.msk [vmem:[#allocation2 + $0x14] sm:$0xf] %vm416_vm2, %v441_v13  ;;  %426 = vst.msk [vmem:[#allocation2 + $0x10] sm:$0xf] %vm416_vm2, %v423_v14 }
 0x1d1   : > { %v461_v15 = vpop.permute.xlu1 %460  ;;  %v428_v16 = vpop.permute.xlu0 %427 }
 0x1d2   : > { %464 = vst.msk [vmem:[#allocation2 + $0x28] sm:$0xf] %vm416_vm2, %v461_v15  ;;  %431 = vst.msk [vmem:[#allocation2 + $0x20] sm:$0xf] %vm416_vm2, %v428_v16 }
 0x1d5   : > { %v446_v17 = vpop.permute.xlu0 %445  ;;  %v436_v18 = vpop.permute.xlu1 %435 }
 0x1d6   : > { %449 = vst.msk [vmem:[#allocation2 + $0x24] sm:$0xf] %vm416_vm2, %v446_v17  ;;  %439 = vst.msk [vmem:[#allocation2 + $0x4] sm:$0xf] %vm416_vm2, %v436_v18 }
 0x1d9   : > { %v456_v19 = vpop.permute.xlu0 %455  ;;  %v451_v20 = vpop.permute.xlu1 %450 }
 0x1da   : > { %459 = vst.msk [vmem:[#allocation2 + $0x18] sm:$0xf] %vm416_vm2, %v456_v19  ;;  %454 = vst.msk [vmem:[#allocation2 + $0x8] sm:$0xf] %vm416_vm2, %v451_v20 }
 0x1dd   : > { %v466_v21 = vpop.permute.xlu0 %465  ;;  %v471_v22 = vpop.permute.xlu1 %470 }
 0x1de   : > { %469 = vst.msk [vmem:[#allocation2 + $0xc] sm:$0xf] %vm416_vm2, %v466_v21  ;;  %474 = vst.msk [vmem:[#allocation2 + $0x1c] sm:$0xf] %vm416_vm2, %v471_v22 }
 0x1e1   : > { %v476_v23 = vpop.permute.xlu0 %475 }
 0x1e2   : > { %479 = vst.msk [vmem:[#allocation2 + $0x2c] sm:$0xf] %vm416_vm2, %v476_v23 }
 0x1e3 PF: > { %s1883_s1 = sld [smem:[#allocation21_spill]]  ;;  %vm492_vm3 = vcmask 64512   ;;  %v1382_v24 = vmov 0.0   ;;  %vm1383_vm4 = vmmov 0   ;;  %vm555_vm5 = vcmask 1043456   ;;  %v647_v51 = vld [vmem:[%s1665_s7] sm:$0xff] }
 0x1e4   : > { %910 = vmatprep.subr.bf16.mxu0 %v1382_v24  ;;  %912 = vmatprep.mubr.msk.bf16.mxu0 %vm1383_vm4, %v1382_v24  ;;  %v600_v42 = vld [vmem:[%s302_s17] sm:$0xf]  ;;  %vm649_vm6 = vcmask 261120  }
 0x1e5   : > { %916 = vmatprep.subr.bf16.mxu1 %v1382_v24  ;;  %918 = vmatprep.mubr.msk.bf16.mxu1 %vm1383_vm4, %v1382_v24  ;;  %v605_v44 = vsel %vm555_vm5, %v600_v42, 0 }
 0x1e9   : > { %s874_s30 = sshll.u32 %s1883_s1, 2  ;;  %p882_p1 = scmp.ne.s32.totalorder %s1883_s1, 3 }
 0x1ea   : > { %s482_s21 = scalar_lea.vmem [#allocation2], %s874_s30  ;;  %s1884_s24 = sld [smem:[#allocation36_spill]] (!%p882_p1) }
 0x1eb   : > { %v876_v25 = vld [vmem:[%s482_s21 + $0x10] sm:$0xf]  ;;  %v483_v27 = vld [vmem:[%s482_s21] sm:$0xf] }
 0x1ec   : > { %v497_v26 = vsel %vm492_vm3, %v876_v25, 0  ;;  %v878_v38 = vld [vmem:[%s482_s21 + $0x20] sm:$0xf] }
 0x1ed   : > { %911 = vmatpush3.bf16.xpose.msra.mxu0 %v497_v26  ;;  %v557_v39 = vsel %vm555_vm5, %v878_v38, 0 }
 0x1ee   : > { %917 = vmatpush3.bf16.msra.mxu1 %v557_v39 }
 0x1ef   : > { %922 = vmatprep.subr.bf16.mxu1 %v1382_v24 }
 0x1f4   : > { %913 = vmatmul.mubr.msk.bf16.vlgmr.msra.gmra.mxu0 %vm492_vm3, %v483_v27 }
 0x2b4   : > { %v533_v28 = vpop.f32.mrf.mxu0 }
 0x2b5   : > { %v539_v29 = vsel %vm492_vm3, %v533_v28, -inf }
 0x2b6   : > { %540 = vmax.xlane.f32.xlu0 %v539_v29  ;;  %v914_v30 = vpop.f32.mrf.mxu0 }
 0x2b8   : > { %v536_v31 = vpop.f32.mrf.mxu0 }
 0x2ba   : > { %v915_v32 = vpop.f32.mrf.mxu0 }
 0x33f   : > { %v541_v33 = vpop.xlane.xlu0 %540 }
 0x340   : > { %v542_v34 = vsub.f32 %v533_v28, %v541_v33 }
 0x342   : > { %v543_v35 = vmul.f32 1.442695, %v542_v34 }
 0x344   : > { %1094 = vpow2.f32 %v543_v35 }
 0x351   : > { %v1095_v36 = vpop.eup %1094 }
 0x352   : > { %v545_v37 = vsel %vm492_vm3, %v1095_v36, 0.0 }
 0x353   : > { %546 = vadd.xlane.f32.xlu0 %v545_v37 }
 0x3dc   : > { %v547_v40 = vpop.xlane.xlu0 %546 }
 0x3dd   : > { %1096 = vrcp.f32 %v547_v40 }
 0x3ea   : > { %v1097_v41 = vpop.eup %1096 }
 0x3eb   : > { %v549_v43 = vmul.f32 %v1097_v41, %v1095_v36 }
 0x3ed   : > { %550 = vst.msk [vmem:[%s340_s0] sm:$0xff] %vm492_vm3, %v549_v43  ;;  %v551_v45 = vpack.c.bf16 %v549_v43, %v549_v43 }
 0x3ef   : > { %919 = vmatmul.mubr.msk.bf16.vlgmr.msra.gmra.mxu1 %vm492_vm3, %v551_v45 }
 0x3f0   : > { %923 = vmatpush3.bf16.msra.mxu1 %v605_v44  ;;  %924 = vmatprep.mubr.msk.bf16.mxu1 %vm1383_vm4, %v1382_v24 }
 0x4af   : > { %v593_v46 = vpop.f32.mrf.mxu1 }
 0x4b0   : > { %v599_v47 = vpack.c.bf16 %v593_v46, %v593_v46 }
 0x4b1   : > { %v920_v48 = vpop.f32.mrf.mxu1 }
 0x4b2   : > { %925 = vmatmul.mubr.msk.bf16.vlgmr.msra.gmra.mxu1 %vm492_vm3, %v599_v47 }
 0x4b3   : > { %v596_v49 = vpop.f32.mrf.mxu1 }
 0x4b5   : > { %v921_v50 = vpop.f32.mrf.mxu1 }
 0x572   : > { %v641_v52 = vpop.f32.mrf.mxu1 }
 0x573   : > { %v648_v53 = vadd.f32 %v647_v51, %v641_v52 }
 0x574   : > { %v926_v54 = vpop.f32.mrf.mxu1  ;;  %654 = sbr.rel (%p882_p1) target bundleno = 1408 (0x580), region = 60 }
 0x575   : > { %650 = vst.msk [vmem:[%s1665_s7] sm:$0xff] %vm649_vm6, %v648_v53 }
 0x576   : > { %v644_v55 = vpop.f32.mrf.mxu1 }
 0x578   : > { %v927_v56 = vpop.f32.mrf.mxu1 }
 0x579   : > { %v883_v58 = vld [vmem:[%s1884_s24] ss:$0 sm:$0xff] }
 0x57c   : > { %v655_v57 = vld [vmem:[%s1665_s7] sm:$0xff] }
 0x57d   : > { %v663_v59 = vadd.f32 %v883_v58, %v655_v57 }
 0x57f   : > { %664 = vst.msk [vmem:[%s1665_s7] sm:$0xff] %vm649_vm6, %v663_v59 }
 0x580 PF: > { %s1885_s22 = sld [smem:[#allocation22_spill]]  ;;  %s684_s2 = sshll.u32 %s1665_s7, 4  ;;  %s685_s2 = int_to_ptr.vmem [resolvable:$true] %s684_s2 }
 0x581   : > { %s1886_s25 = sld [smem:[#allocation25_spill]]  ;;  %s666_s1 = scalar_lea.sflag [#allocation5], %s1640_s4 }
 0x582   : > { %s1887_s6 = sld [smem:[#allocation37_spill]]  ;;  %s1180_s30 = scalar_lea.vmem %s685_s2, 128 }
 0x583   : > { %p1181_p13 = scmp.ne.s32.totalorder %s685_s2, %s1180_s30  ;;  %s1384_s21 = smov [#allocation9]  }
 0x584   : > { %s1184_s15 = sshll.u32 %s1384_s21, 4  ;;  %s1185_s15 = int_to_ptr.vmem [resolvable:$false] %s1184_s15 }
 0x585   : > { %s1186_s17 = scalar_lea.vmem %s1185_s15, 256  ;;  %p1187_p8 = scmp.lt.s32.totalorder %s685_s2, %s1185_s15 }
 0x586   : > { %s886_s19 = sshll.u32 %s1885_s22, 7  ;;  %p1188_p10 = scmp.lt.s32.totalorder %s1186_s17, %s1180_s30 }
 0x587   : > { %p1888_p4 = scmp.ne.s32.totalorder %s1886_s25, 0 }
 0x588   : > { %s682_s16 = scalar_lea.hbm %s1887_s6, %s886_s19  ;;  %p1189_p11 = por %p1188_p10, %p1187_p8 }
 0x589   : > { %p1182_p2 = pnand %p1181_p13, %p1888_p4 }
 0x58b   : > { %p1183_p6 = pneg %p1182_p2 }
 0x58d   : > { %p1190_p5 = pnand %p1189_p11, %p1183_p6 }
 0x58f   : > { %1193 = shalt.err (!%p1190_p5)
}
 0x590   : > { %s1194_s24 = scalar_lea.hbm %s682_s16, 128  ;;  %s1198_s19 = scalar_lea.hbm %s1887_s6, 256 }
 0x591   : > { %p1195_p12 = scmp.ne.s32.totalorder %s682_s16, %s1194_s24  ;;  %p1199_p3 = scmp.lt.s32.totalorder %s682_s16, %s1887_s6 }
 0x592   : > { %p1200_p0 = scmp.lt.s32.totalorder %s1198_s19, %s1194_s24 }
 0x593   : > { %p1196_p7 = pnand %p1195_p12, %p1888_p4 }
 0x594   : > { %p1201_p1 = por %p1200_p0, %p1199_p3 }
 0x595   : > { %p1197_p9 = pneg %p1196_p7 }
 0x597   : > { %p1202_p13 = pnand %p1201_p1, %p1197_p9 }
 0x599   : > { %1205 = shalt.err (!%p1202_p13)
}
 0x59a   : > { %s1889_s30 = sld [smem:[#allocation21_spill]]  ;;  %s887_s17 = sshll.u32 %s1885_s22, 2 }
 0x59b   : > { %s1890_s21 = sld [smem:[#allocation18_spill]]  ;;  %s699_s4 = sshll.u32 %s340_s0, 4  ;;  %s700_s4 = int_to_ptr.vmem [resolvable:$true] %s699_s4 }
 0x59c   : > { %s1891_s15 = sld [smem:[#allocation27_spill]]  ;;  %s1206_s9 = scalar_lea.vmem %s700_s4, 128 }
 0x59d   : > { %936 = dma.vmem_to_hbm [thread:$0]  (%p1888_p4), %s685_s2, 128, %s682_s16, %s666_s1  }
 0x59e   : > { %s1892_s24 = sld [smem:[#allocation38_spill]]  ;;  %p1207_p2 = scmp.ne.s32.totalorder %s700_s4, %s1206_s9 }
 0x59f   : > { %s1385_s25 = smov [#allocation10]  }
 0x5a0   : > { %s695_s7 = sadd.s32 %s1889_s30, %s887_s17  ;;  %s1210_s8 = sshll.u32 %s1385_s25, 4  ;;  %s1211_s8 = int_to_ptr.vmem [resolvable:$false] %s1210_s8 }
 0x5a1   : > { %s888_s5 = sshll.u32 %s695_s7, 7  ;;  %s1894_s6 = sand.u32 1, %s1890_s21  }
 0x5a2   : > { %s671_s14 = scalar_lea.sflag [#allocation11], %s1894_s6  ;;  %p1895_p6 = scmp.ne.s32.totalorder %s1891_s15, 0 }
 0x5a3   : > { %s1212_s22 = scalar_lea.vmem %s1211_s8, 256  ;;  %p1213_p4 = scmp.lt.s32.totalorder %s700_s4, %s1211_s8 }
 0x5a4   : > { %s1893_s19 = smov %s1892_s24  ;;  %s697_s3 = scalar_lea.hbm %s1892_s24, %s888_s5 }
 0x5a5   : > { %p1208_p8 = pnand %p1207_p2, %p1895_p6  ;;  %p1214_p11 = scmp.lt.s32.totalorder %s1212_s22, %s1206_s9 }
 0x5a7   : > { %p1209_p10 = pneg %p1208_p8  ;;  %p1215_p5 = por %p1214_p11, %p1213_p4 }
 0x5a9   : > { %p1216_p12 = pnand %p1215_p5, %p1209_p10 }
 0x5ab   : > { %1219 = shalt.err (!%p1216_p12)
}
 0x5ac   : > { %s1220_s11 = scalar_lea.hbm %s697_s3, 128  ;;  %s1224_s6 = scalar_lea.hbm %s1893_s19, 1024 }
 0x5ad   : > { %p1221_p7 = scmp.ne.s32.totalorder %s697_s3, %s1220_s11  ;;  %p1225_p0 = scmp.lt.s32.totalorder %s697_s3, %s1893_s19 }
 0x5ae   : > { %p1226_p1 = scmp.lt.s32.totalorder %s1224_s6, %s1220_s11 }
 0x5af   : > { %p1222_p9 = pnand %p1221_p7, %p1895_p6 }
 0x5b0   : > { %p1227_p13 = por %p1226_p1, %p1225_p0 }
 0x5b1   : > { %p1223_p3 = pneg %p1222_p9 }
 0x5b3   : > { %p1228_p2 = pnand %p1227_p13, %p1223_p3 }
 0x5b5   : > { %1231 = shalt.err (!%p1228_p2)
}
 0x5b6   : > { %937 = dma.vmem_to_hbm [thread:$0]  (%p1895_p6), %s700_s4, 128, %s697_s3, %s671_s14  }
 0x5b7 PF: > { %s1896_s8 = sld [smem:[#allocation20_spill]]  ;;  %p961_p8 = scmp.ge.s32.totalorder %s1362_s10, 2 }
 0x5b8   : > { %s1897_s9 = sld [smem:[#allocation26_spill]] }
 0x5bd   : > { %s711_s1 = sand.u32 1, %s1896_s8  }
 0x5be   : > { %p1898_p10 = scmp.ne.s32.totalorder %s1897_s9, 0  ;;  %s712_s30 = scalar_lea.sflag [#allocation5], %s711_s1 }
 0x5c0   : > { %p952_p4 = pnand %p961_p8, %p1898_p10 }
 0x5c2   : > { %p953_p11 = pneg %p952_p4 }
 0x5c4   : > { %1301 = dma.done.wait (%p953_p11), %s712_s30, 128  }
 0x5c5   : > { %1303 = vsyncadd (%p953_p11), %s712_s30, 4294967168  ;;  %s1899_s21 = sld [smem:[#allocation17_spill]] }
 0x5c6   : > { %s1900_s17 = sld [smem:[#allocation28_spill]] }
 0x5cb   : > { %s720_s7 = sand.u32 1, %s1899_s21  }
 0x5cc   : > { %p1901_p5 = scmp.ne.s32.totalorder %s1900_s17, 0  ;;  %s721_s15 = scalar_lea.sflag [#allocation11], %s720_s7 }
 0x5ce   : > { %p955_p12 = pnand %p961_p8, %p1901_p5 }
 0x5d0   : > { %p956_p7 = pneg %p955_p12 }
 0x5d2   : > { %1305 = dma.done.wait (%p956_p7), %s721_s15, 128  }
 0x5d3   : > { %1307 = vsyncadd (%p956_p7), %s721_s15, 4294967168  ;;  %s27_s10 = sadd.s32 1, %s1362_s10   ;;  %s1903_s21 = sld [smem:[#allocation18_spill]] }
 0x5d4   : > { %p1755_p6 = scmp.ge.s32.totalorder %s27_s10, 10   ;;  %s1904_s24 = sld [smem:[#allocation19_spill]] }
 0x5d5   : > { %s1905_s14 = smov %s1614_s27  ;;  %s1906_s30 = sld [smem:[#allocation23_spill]] }
 0x5d6   : > { %s1907_s7 = sld [smem:[#allocation24_spill]]  ;;  %s1910_s22 = smov %s1318_s23 }
 0x5d7   : > { %s1908_s8 = sld [smem:[#allocation29_spill]]  ;;  %s1911_s23 = smov %s1617_s18 }
 0x5d8   : > { %s1909_s9 = sld [smem:[#allocation31_spill]]  ;;  %s1912_s25 = smov %s1330_s26 }
 0x5d9   : > { %s1913_s26 = smov %s1606_s20  ;;  %s1914_s27 = smov %s1338_s28 }
 0x5da   : > { %s1915_s28 = smov %s1342_s29  ;;  %s1916_s29 = smov %s1905_s14 }
 0x5db   :  { %26 = sbr.rel (!%p1755_p6) target bundleno = 21 (0x15), region = 139 }
 0x5e0   :  { %726 = vsyncpa [#allocation4], 1 }
 0x5e1   :  { %728 = vsyncpa [#allocation4 + $0x1], 1 }
 0x5e2   :  { %729 = vsyncpa [#allocation7], 1 }
 0x5e3   :  { %730 = vsyncpa [#allocation5], 1 }
 0x5e4   :  { %732 = vsyncpa [#allocation5 + $0x1], 1 }
 0x5e5   :  { %733 = vsyncpa [#allocation11], 1 }
 0x5e6   :  { %735 = vsyncpa [#allocation11 + $0x1], 1 }

</bundles_post_ra>
